<compile_context>
chip_gen: v7x
topology: tpu7x:2x2x1
jax: 0.10.0
libtpu: 0.0.40
codegen_flags: <defaults>
</compile_context>

<pallas_src>
import jax
import jax.numpy as jnp
from jax.experimental import pallas as pl
from jax.experimental.pallas import tpu as pltpu


def _ffn_kernel(x_ref, gu_w_ref, down_w_ref, o_ref, acc_ref):
    # x_ref:      [TM, H]        bf16   (resident across the I axis)
    # gu_w_ref:   [H, 2*TI]      bf16   ([gate_tile | up_tile])
    # down_w_ref: [TI, H]        bf16
    # o_ref:      [TM, H]        out dtype
    # acc_ref:    [TM, H]        f32 scratch accumulator
    i = pl.program_id(1)

    @pl.when(i == 0)
    def _init():
        acc_ref[...] = jnp.zeros_like(acc_ref)

    ti = gu_w_ref.shape[-1] // 2

    # Fused gate+up projection: one MXU dot, f32 accumulate.
    gu = jnp.dot(x_ref[...], gu_w_ref[...], preferred_element_type=jnp.float32)
    gate = gu[:, :ti]
    up = gu[:, ti:]

    # SiLU(gate) * up in f32 (VPU/EUP), then bf16 for the down-proj MXU dot.
    hidden = (gate * jax.nn.sigmoid(gate)) * up
    acc_ref[...] += jnp.dot(hidden.astype(down_w_ref.dtype), down_w_ref[...],
                            preferred_element_type=jnp.float32)

    @pl.when(i == pl.num_programs(1) - 1)
    def _finalize():
        o_ref[...] = acc_ref[...].astype(o_ref.dtype)


def _pick_tile(dim, candidates):
    for c in candidates:
        if c <= dim and dim % c == 0:
            return c
    return dim  # fall back to the full dimension (block == full array)


def feed_forward(x, gate_w, up_w, down_w, *, tm=None, ti=None):
    """x: [T, H]; gate_w/up_w: [H, I]; down_w: [I, H]  ->  [T, H]

    Weights are stored pre-transposed as [in, out] (PyTorch nn.Linear stores
    [out, in]); matmul inputs are cast to bf16, accumulation is f32.
    """
    T, H = x.shape
    I = gate_w.shape[1]
    assert gate_w.shape == (H, I) and up_w.shape == (H, I) and down_w.shape == (I, H)

    # Tile choices: token tile TM (parallel axis), intermediate tile TI
    # (reduction axis, streamed).  Kept modest so the double-buffered working
    # set fits v7x's 64 MiB VMEM even at real model sizes.
    if tm is None:
        tm = _pick_tile(T, (256, 128))
    if ti is None:
        ti = _pick_tile(I, (512, 256, 128))
    assert T % tm == 0 and I % ti == 0

    n_t = T // tm
    n_i = I // ti

    # bf16 matmul inputs (halves weight HBM traffic, native MXU path).
    x_bf = x.astype(jnp.bfloat16)
    # Pack gate/up per I-tile: [n_i, H, 2*ti] with slice i = [gate_i | up_i].
    gate_tiles = gate_w.astype(jnp.bfloat16).reshape(H, n_i, ti).transpose(1, 0, 2)
    up_tiles = up_w.astype(jnp.bfloat16).reshape(H, n_i, ti).transpose(1, 0, 2)
    gu_w = jnp.concatenate([gate_tiles, up_tiles], axis=-1)  # [n_i, H, 2*ti]
    down_bf = down_w.astype(jnp.bfloat16)                    # [I, H]

    out_dtype = x.dtype
    out_itemsize = jnp.dtype(out_dtype).itemsize

    # VMEM budget: double-buffered inputs/outputs + f32 accumulator, with
    # headroom (well under the 64 MiB v7x physical VMEM for default tiles).
    working = (
        2 * (tm * H * 2)              # x tile, bf16, double-buffered
        + 2 * (H * 2 * ti * 2)        # fused gate/up weight tile
        + 2 * (ti * H * 2)            # down weight tile
        + 2 * (tm * H * out_itemsize) # output tile
        + tm * H * 4                  # f32 accumulator scratch
    )
    vmem_limit = int(min(128 * 1024 * 1024, max(2 * working, 16 * 1024 * 1024)))

    cost = pl.CostEstimate(
        flops=6 * T * H * I,                       # 2*T*H*(2I) + 2*T*I*H
        transcendentals=T * I,                     # sigmoid
        bytes_accessed=(T * H * 2                  # x (bf16)
                        + 3 * H * I * 2            # gate/up/down weights (bf16)
                        + T * H * out_itemsize),   # output
    )

    return pl.pallas_call(
        _ffn_kernel,
        out_shape=jax.ShapeDtypeStruct((T, H), out_dtype),
        grid=(n_t, n_i),
        in_specs=[
            pl.BlockSpec((tm, H), lambda t, i: (t, 0)),            # x (resident over i)
            pl.BlockSpec((None, H, 2 * ti), lambda t, i: (i, 0, 0)),  # fused gate/up tile
            pl.BlockSpec((ti, H), lambda t, i: (i, 0)),            # down tile
        ],
        out_specs=pl.BlockSpec((tm, H), lambda t, i: (t, 0)),
        scratch_shapes=[pltpu.VMEM((tm, H), jnp.float32)],
        compiler_params=pltpu.CompilerParams(
            dimension_semantics=("parallel", "arbitrary"),
            vmem_limit_bytes=vmem_limit,
        ),
        cost_estimate=cost,
    )(x_bf, gu_w, down_bf)


def _reference(x, gate_w, up_w, down_w):
    # Mirrors the kernel's numerics: bf16 matmul inputs, f32 accumulation.
    xb = x.astype(jnp.bfloat16)
    g = jnp.dot(xb, gate_w.astype(jnp.bfloat16), preferred_element_type=jnp.float32)
    u = jnp.dot(xb, up_w.astype(jnp.bfloat16), preferred_element_type=jnp.float32)
    h = (g * jax.nn.sigmoid(g) * u).astype(jnp.bfloat16)
    return jnp.dot(h, down_w.astype(jnp.bfloat16), preferred_element_type=jnp.float32)


if __name__ == "__main__":
    # Small, lane-aligned demo config: hidden=128, intermediate=256, batch=2, seq=8.
    batch, seq, hidden, inter = 2, 8, 128, 256

    key = jax.random.PRNGKey(0)
    kx, kg, ku, kd = jax.random.split(key, 4)

    x = jax.random.normal(kx, (batch, seq, hidden), dtype=jnp.float32)
    # Weights stored as [in, out] for the kernel (transpose of nn.Linear storage).
    gate_w = jax.random.normal(kg, (hidden, inter), dtype=jnp.float32) * 0.05
    up_w = jax.random.normal(ku, (hidden, inter), dtype=jnp.float32) * 0.05
    down_w = jax.random.normal(kd, (inter, hidden), dtype=jnp.float32) * 0.05

    # Flatten (batch, seq) -> tokens, restore afterwards.
    x2d = x.reshape(batch * seq, hidden)
    # ti=128 forces two reduction steps so the accumulator init/finalize path
    # is exercised even at this small size (grid = (1, 2)).
    out2d = feed_forward(x2d, gate_w, up_w, down_w, ti=128)
    out = out2d.reshape(batch, seq, hidden)
    jax.block_until_ready(out)

    ref = _reference(x2d, gate_w, up_w, down_w).reshape(batch, seq, hidden)
    assert out.shape == ref.shape
    assert jnp.allclose(out, ref, atol=1e-2, rtol=1e-2), "mismatch vs reference"

    print("KERNEL_OK")
</pallas_src>

<mosaic_0001>
module attributes {stable_mosaic.version = 11 : i64} {
  func.func @_ffn_kernel(%arg0: i32, %arg1: i32, %arg2: memref<16x128xbf16, #tpu.memory_space<vmem>>, %arg3: memref<1x128x256xbf16, #tpu.memory_space<vmem>>, %arg4: memref<128x128xbf16, #tpu.memory_space<vmem>>, %arg5: memref<16x128xf32, #tpu.memory_space<vmem>>, %arg6: memref<16x128xf32, #tpu.memory_space<vmem>>) attributes {dimension_semantics = [#tpu.dimension_semantics<parallel>, #tpu.dimension_semantics<arbitrary>], iteration_bounds = array<i64: 1, 2>, scalar_prefetch = 0 : i64, scratch_operands = 1 : i64, tpu.core_type = #tpu.core_type<tc>, window_params = [{transform_indices = @transform_0, window_bounds = array<i64: 16, 128>}, {transform_indices = @transform_1, window_bounds = array<i64: 1, 128, 256>}, {transform_indices = @transform_2, window_bounds = array<i64: 128, 128>}, {transform_indices = @transform_3, window_bounds = array<i64: 16, 128>}]} {
    %c0_i32 = arith.constant 0 : i32
    %0 = arith.cmpi eq, %arg1, %c0_i32 : i32
    %1 = arith.extui %0 : i1 to i32
    %c0_i32_0 = arith.constant 0 : i32
    %2 = arith.cmpi ne, %1, %c0_i32_0 : i32
    scf.if %2 {
      %cst_14 = arith.constant 0.000000e+00 : f32
      %25 = vector.broadcast %cst_14 : f32 to vector<16x128xf32>
      %c0_15 = arith.constant 0 : index
      %c0_16 = arith.constant 0 : index
      %26 = vector.load %arg6[%c0_15, %c0_16] : memref<16x128xf32, #tpu.memory_space<vmem>>, vector<16x128xf32>
      tpu.vector_store %arg6[%c0_15, %c0_16], %25 {strides = array<i32>} : memref<16x128xf32, #tpu.memory_space<vmem>>, vector<16x128xf32>,
    } else {
    }
    %c0 = arith.constant 0 : index
    %c0_1 = arith.constant 0 : index
    %3 = vector.load %arg2[%c0, %c0_1] : memref<16x128xbf16, #tpu.memory_space<vmem>>, vector<16x128xbf16>
    %c0_2 = arith.constant 0 : index
    %c0_3 = arith.constant 0 : index
    %c0_4 = arith.constant 0 : index
    %4 = vector.load %arg3[%c0_2, %c0_3, %c0_4] : memref<1x128x256xbf16, #tpu.memory_space<vmem>>, vector<1x128x256xbf16>
    %5 = vector.shape_cast %4 : vector<1x128x256xbf16> to vector<128x256xbf16>
    %cst = arith.constant dense<0.000000e+00> : vector<16x256xf32>
    %6 = tpu.matmul %3, %5, %cst {dimension_numbers = #tpu.dot_dimension_numbers<[1], [0], [0], [1], [0, 0, 1, 1], [], []>} : vector<16x128xbf16>, vector<128x256xbf16>, vector<16x256xf32> -> vector<16x256xf32>
    %7 = vector.extract_strided_slice %6 {offsets = [0, 0], sizes = [16, 128], strides = [1, 1]} : vector<16x256xf32> to vector<16x128xf32>
    %8 = vector.extract_strided_slice %6 {offsets = [0, 128], sizes = [16, 128], strides = [1, 1]} : vector<16x256xf32> to vector<16x128xf32>
    %9 = arith.negf %7 : vector<16x128xf32>
    %10 = math.exp %9 : vector<16x128xf32>
    %cst_5 = arith.constant 1.000000e+00 : f32
    %11 = vector.broadcast %cst_5 : f32 to vector<16x128xf32>
    %12 = arith.addf %11, %10 : vector<16x128xf32>
    %13 = arith.divf %11, %12 : vector<16x128xf32>
    %14 = arith.mulf %7, %13 : vector<16x128xf32>
    %15 = arith.mulf %14, %8 : vector<16x128xf32>
    %c0_6 = arith.constant 0 : index
    %c0_7 = arith.constant 0 : index
    %16 = vector.load %arg6[%c0_6, %c0_7] : memref<16x128xf32, #tpu.memory_space<vmem>>, vector<16x128xf32>
    %17 = arith.truncf %15 : vector<16x128xf32> to vector<16x128xbf16>
    %c0_8 = arith.constant 0 : index
    %c0_9 = arith.constant 0 : index
    %18 = vector.load %arg4[%c0_8, %c0_9] : memref<128x128xbf16, #tpu.memory_space<vmem>>, vector<128x128xbf16>
    %cst_10 = arith.constant dense<0.000000e+00> : vector<16x128xf32>
    %19 = tpu.matmul %17, %18, %cst_10 {dimension_numbers = #tpu.dot_dimension_numbers<[1], [0], [0], [1], [0, 0, 1, 1], [], []>} : vector<16x128xbf16>, vector<128x128xbf16>, vector<16x128xf32> -> vector<16x128xf32>
    %20 = arith.addf %16, %19 : vector<16x128xf32>
    %c0_11 = arith.constant 0 : index
    %c0_12 = arith.constant 0 : index
    %21 = vector.load %arg6[%c0_11, %c0_12] : memref<16x128xf32, #tpu.memory_space<vmem>>, vector<16x128xf32>
    tpu.vector_store %arg6[%c0_11, %c0_12], %20 {strides = array<i32>} : memref<16x128xf32, #tpu.memory_space<vmem>>, vector<16x128xf32>,
    %c1_i32 = arith.constant 1 : i32
    %22 = arith.cmpi eq, %arg1, %c1_i32 : i32
    %23 = arith.extui %22 : i1 to i32
    %c0_i32_13 = arith.constant 0 : i32
    %24 = arith.cmpi ne, %23, %c0_i32_13 : i32
    scf.if %24 {
      %c0_14 = arith.constant 0 : index
      %c0_15 = arith.constant 0 : index
      %25 = vector.load %arg6[%c0_14, %c0_15] : memref<16x128xf32, #tpu.memory_space<vmem>>, vector<16x128xf32>
      %c0_16 = arith.constant 0 : index
      %c0_17 = arith.constant 0 : index
      %26 = vector.load %arg5[%c0_16, %c0_17] : memref<16x128xf32, #tpu.memory_space<vmem>>, vector<16x128xf32>
      tpu.vector_store %arg5[%c0_16, %c0_17], %25 {strides = array<i32>} : memref<16x128xf32, #tpu.memory_space<vmem>>, vector<16x128xf32>,
    } else {
    }
    return
  }
  func.func @transform_0(%arg0: i32, %arg1: i32) -> (i32, i32) {
    %c0_i32 = arith.constant 0 : i32
    %c0_i32_0 = arith.constant 0 : i32
    return %arg0, %c0_i32 : i32, i32
  }
  func.func @transform_1(%arg0: i32, %arg1: i32) -> (i32, i32, i32) {
    %c0_i32 = arith.constant 0 : i32
    %c0_i32_0 = arith.constant 0 : i32
    %c0_i32_1 = arith.constant 0 : i32
    return %arg1, %c0_i32, %c0_i32_0 : i32, i32, i32
  }
  func.func @transform_2(%arg0: i32, %arg1: i32) -> (i32, i32) {
    %c0_i32 = arith.constant 0 : i32
    %c0_i32_0 = arith.constant 0 : i32
    return %arg1, %c0_i32 : i32, i32
  }
  func.func @transform_3(%arg0: i32, %arg1: i32) -> (i32, i32) {
    %c0_i32 = arith.constant 0 : i32
    %c0_i32_0 = arith.constant 0 : i32
    return %arg0, %c0_i32 : i32, i32
  }
}

</mosaic_0001>

<bundles_post_ra>
// kernel: tpu_custom_call.1
= control target key start
LH: loop header
LB: loop body
LE: loop exit
PB: predicated region body
PF: predicated region fallthrough
CT: control target
= control target key end

     0   :  { %8 = vsyncpa [#allocation4], 0  ;;  %s1321_s0 = inlined_call_operand.hbm [shape: bf16[16,128], index: 0, kind: input, shape index: {}]   ;;  %s1322_s1 = inlined_call_operand.hbm [shape: bf16[2,128,256], index: 1, kind: input, shape index: {}]   ;;  %s1323_s2 = inlined_call_operand.hbm [shape: bf16[256,128], index: 2, kind: input, shape index: {}]   ;;  %s1324_s3 = inlined_call_operand.hbm [shape: f32[16,128], index: 3, kind: output, shape index: {}]  }
   0x1   :  { %9 = vsyncpa [#allocation7], 0 }
   0x2   :  { %11 = vsyncpa [#allocation7 + $0x1], 0 }
   0x3   :  { %12 = vsyncpa [#allocation5], 0  ;;  %s1069_s12 = smov 0   ;;  %s1071_s13 = smov 0  }
   0x4   :  { %s1073_s14 = smov 0   ;;  %s1075_s15 = smov 0  }
   0x5   :  { %s1077_s16 = smov 0   ;;  %s1079_s17 = smov 0  }
   0x6 LB: > { %s27_s18 = sadd.s32 1, %s1029_s16  ;;  %s63_s19 = sadd.s32 1, %s1021_s14  ;;  %s1033_s17 = sphi %s1079_s17, %s18_s17   ;;  %s1029_s16 = sphi %s1077_s16, %s1340_s16   ;;  %s1025_s15 = sphi %s1075_s15, %s1339_s15   ;;  %s1021_s14 = sphi %s1073_s14, %s1338_s14   ;;  %s1017_s13 = sphi %s1071_s13, %s1337_s13   ;;  %s1013_s12 = sphi %s1069_s12, %s1336_s12  }
   0x7   : > { %p28_p0 = scmp.ge.s32.totalorder %s27_s18, 2  ;;  %p70_p1 = scmp.ne.s32.totalorder %s1021_s14, %s1017_s13 }
   0x8   : > { %p71_p2 = scmp.eq.s32.totalorder %s1033_s17, 0  ;;  %p756_p4 = scmp.lt.s32.totalorder %s1033_s17, 2 }
   0x9   : > { %s1342_s18 = smov (%p28_p0, %s27_s18), 0  ;;  %s168_s21 = sand.u32 1, %s1033_s17  }
   0xa   : > { %p72_p3 = por %p71_p2, %p70_p1  ;;  %s60_s20 = ssub.s32 %s1029_s16, %s1342_s18 }
   0xb   : > { %p61_p5 = scmp.eq.s32.totalorder %s60_s20, 0  ;;  %s170_s22 = sand.u32 1, %s1021_s14  }
   0xc   : > { %s701_s23 = sshll.u32 %s1029_s16, 11  ;;  %s658_s25 = sshll.u32 %s170_s22, 7 }
   0xd   : > { %s1113_s24 = scalar_select %p61_p5, %s1021_s14, %s63_s19  }
   0xe   : > { %s1118_s28 = scalar_lea.hbm %s1322_s1, %s701_s23  ;;  %p1120_p6 = pnand %p756_p4, %p72_p3 }
   0xf   : > { %s172_s30 = scalar_lea.vmem [#allocation6], %s658_s25  ;;  %s1126_s5 = sshll.u32 %s170_s22, 6 }
  0x10   : > { %s179_s4 = sshll.u32 %s172_s30, 4  ;;  %s1128_s6 = scalar_lea.sflag [#allocation7], %s168_s21  ;;  %s1124_s4 = int_to_ptr.vmem [resolvable:$true] %s179_s4 }
  0x11   : > { %s861_s7 = scalar_lea.hbm %s1118_s28, 2048  ;;  %p863_p8 = pneg %p1120_p6 }
  0x12   : > { %p862_p7 = scmp.ne.s32.totalorder %s1118_s28, %s861_s7  ;;  %s866_s10 = scalar_lea.hbm %s1322_s1, 4096 }
  0x13   : > { %p867_p11 = scmp.lt.u32.totalorder %s1118_s28, %s1322_s1  ;;  %p868_p12 = scmp.lt.u32.totalorder %s866_s10, %s861_s7 }
  0x14   : > { %p864_p9 = pnand %p863_p8, %p862_p7  ;;  %p870_p0 = scmp.lt.u32.totalorder %s861_s7, %s1118_s28 }
  0x15   : > { %p869_p13 = por %p868_p12, %p867_p11 }
  0x16   : > { %p865_p10 = pneg %p864_p9 }
  0x17   : > { %p871_p1 = por %p870_p0, %p869_p13 }
  0x19   : > { %p872_p2 = pnand %p871_p1, %p865_p10 }
  0x1b   : > { %875 = shalt.err (!%p872_p2)
}
  0x1c   : > { %s876_s20 = scalar_lea.vmem %s1124_s4, 2048  ;;  %s1035_s21 = smov [#allocation6]  }
  0x1d   : > { %p877_p3 = scmp.ne.s32.totalorder %s1124_s4, %s876_s20  ;;  %s881_s22 = sshll.u32 %s1035_s21, 4  ;;  %s882_s22 = int_to_ptr.vmem [resolvable:$false] %s881_s22 }
  0x1e   : > { %s883_s23 = scalar_lea.vmem %s882_s22, 4096  ;;  %p884_p7 = scmp.lt.s32.totalorder %s1124_s4, %s882_s22 }
  0x1f   : > { %p879_p4 = pnand %p877_p3, %p863_p8  ;;  %p885_p9 = scmp.lt.s32.totalorder %s883_s23, %s876_s20 }
  0x21   : > { %p880_p5 = pneg %p879_p4  ;;  %p886_p11 = por %p885_p9, %p884_p7 }
  0x23   : > { %p887_p12 = pnand %p886_p11, %p880_p5 }
  0x25   : > { %890 = shalt.err (!%p887_p12)
}
  0x26   : > { %s1036_s25 = smov 128   ;;  %s1037_s26 = smov 8  }
  0x27   : > { %751 = dma.hbm_to_vmem [thread:$0]  (!%p1120_p6), %s1118_s28, 2048, %s1124_s4, %s1128_s6, %s1036_s25, %s1036_s25, %s1037_s26  }
  0x28   : > { %s193_s27 = scalar_lea.vmem [#allocation8], %s1126_s5  ;;  %s1158_s7 = sadd.s32 4294967295, %s1033_s17  }
  0x29   : > { %s200_s30 = sshll.u32 %s193_s27, 4  ;;  %p76_p10 = scmp.ne.s32.totalorder %s1017_s13, %s1013_s12  ;;  %s1180_s30 = int_to_ptr.vmem [resolvable:$true] %s200_s30 }
  0x2a   : > { %p1325_p13 = scmp.eq.s32.totalorder %s1158_s7, 0  ;;  %p655_p0 = scmp.ge.s32.totalorder %s1033_s17, 1 }
  0x2b   : > { %p139_p1 = scmp.lt.s32.totalorder %s1033_s17, 3  ;;  %s1038_s28 = smov [#allocation3]  }
  0x2c   : > { %p1167_p2 = por %p1325_p13, %p76_p10  ;;  %s154_s4 = sshll.u32 %s1038_s28, 4  ;;  %s1175_s4 = int_to_ptr.vmem [resolvable:$true] %s154_s4 }
  0x2d   : > { %p1171_p3 = pnand %p655_p0, %p139_p1  ;;  %s702_s12 = sshll.u32 %s1029_s16, 10 }
  0x2e   : > { %s1329_s8 = scalar_select %p1167_p2, 1, 0 }
  0x2f   : > { %s1330_s9 = scalar_select %p1171_p3, 1, 0 }
  0x30   : > { %p744_p4 = pneg %p1171_p3  ;;  %s1191_s19 = scalar_lea.hbm %s1323_s2, %s702_s12 }
  0x31   : > { %s891_s20 = scalar_lea.hbm %s1191_s19, 1024  ;;  %s896_s23 = scalar_lea.hbm %s1323_s2, 2048 }
  0x32   : > { %p1184_p5 = pnand %p744_p4, %p1325_p13  ;;  %p892_p7 = scmp.ne.s32.totalorder %s1191_s19, %s891_s20 }
  0x33   : > { %p897_p12 = scmp.lt.u32.totalorder %s1191_s19, %s1323_s2  ;;  %p898_p10 = scmp.lt.u32.totalorder %s896_s23, %s891_s20 }
  0x34   : > { %p894_p9 = pnand %p892_p7, %p863_p8  ;;  %p900_p1 = scmp.lt.u32.totalorder %s891_s20, %s1191_s19 }
  0x35   : > { %p899_p0 = por %p898_p10, %p897_p12 }
  0x36   : > { %p895_p11 = pneg %p894_p9 }
  0x37   : > { %p901_p4 = por %p900_p1, %p899_p0 }
  0x39   : > { %p902_p13 = pnand %p901_p4, %p895_p11 }
  0x3b   : > { %905 = shalt.err (!%p902_p13)
}
  0x3c   : > { %s906_s27 = scalar_lea.vmem %s1180_s30, 1024  ;;  %s1039_s28 = smov [#allocation8]  }
  0x3d   : > { %p907_p7 = scmp.ne.s32.totalorder %s1180_s30, %s906_s27  ;;  %s911_s12 = sshll.u32 %s1039_s28, 4  ;;  %s912_s12 = int_to_ptr.vmem [resolvable:$false] %s911_s12 }
  0x3e   : > { %s913_s10 = scalar_lea.vmem %s912_s12, 2048  ;;  %p914_p3 = scmp.lt.s32.totalorder %s1180_s30, %s912_s12 }
  0x3f   : > { %p909_p9 = pnand %p907_p7, %p863_p8  ;;  %p915_p12 = scmp.lt.s32.totalorder %s913_s10, %s906_s27 }
  0x41   : > { %p910_p2 = pneg %p909_p9  ;;  %p916_p10 = por %p915_p12, %p914_p3 }
  0x43   : > { %p917_p0 = pnand %p916_p10, %p910_p2 }
  0x45   : > { %920 = shalt.err (!%p917_p0)
}
  0x46   : > { %s1040_s11 = smov 64   ;;  %s1041_s20 = smov 4  }
  0x47   : > { %754 = dma.hbm_to_vmem [thread:$0]  (!%p1120_p6), %s1191_s19, 1024, %s1180_s30, %s1128_s6, %s1040_s11, %s1040_s11, %s1041_s20  }
  0x48   : > { %s921_s23 = scalar_lea.hbm %s1321_s0, 128  ;;  %p923_p13 = pneg %p1184_p5 }
  0x49   : > { %p922_p8 = scmp.ne.s32.totalorder %s1321_s0, %s921_s23  ;;  %p928_p11 = scmp.lt.u32.totalorder %s921_s23, %s1321_s0 }
  0x4b   : > { %p924_p2 = pnand %p923_p13, %p922_p8 }
  0x4d   : > { %p925_p3 = pneg %p924_p2 }
  0x4f   : > { %p930_p1 = pnand %p928_p11, %p925_p3 }
  0x51   : > { %933 = shalt.err (!%p930_p1)
}
  0x52   : > { %s934_s29 = scalar_lea.vmem %s1175_s4, 128  ;;  %p942_p9 = scmp.lt.s32.totalorder %s1175_s4, %s1175_s4 }
  0x53   : > { %p935_p6 = scmp.ne.s32.totalorder %s1175_s4, %s934_s29  ;;  %p943_p12 = scmp.lt.s32.totalorder %s934_s29, %s934_s29 }
  0x55   : > { %p937_p4 = pnand %p935_p6, %p923_p13  ;;  %p944_p10 = por %p943_p12, %p942_p9 }
  0x57   : > { %p938_p7 = pneg %p937_p4 }
  0x59   : > { %p945_p0 = pnand %p944_p10, %p938_p7 }
  0x5b   : > { %948 = shalt.err (!%p945_p0)
}
  0x5c   : > { %747 = dma.hbm_to_vmem [thread:$0]  (!%p1184_p5), %s1321_s0, 128, %s1175_s4, [#allocation4], %s1040_s11, %s1040_s11, %s1041_s20  }
  0x5d   : > { %p1332_p8 = scmp.ne.s32.totalorder %s1330_s9, 0 }
  0x5e   : > { %p1333_p2 = scmp.eq.s32.totalorder (!%p1332_p8), %s1158_s7, 0 }
  0x5f   : > { %212 = sbr.rel (%p1332_p8) target bundleno = 647 (0x287), region = 32 }
  0x66   : > { %1000 = dma.done.wait (%p1333_p2), [#allocation4], 128   ;;  %p1334_p13 = pmov %p1333_p2 }
  0x67   : > { %s218_s19 = sand.u32 1, %s1158_s7   ;;  %s220_s12 = sand.u32 1, %s1017_s13  }
  0x68   : > { %1002 = vsyncadd (%p1334_p13), [#allocation4], 4294967168  ;;  %s666_s5 = sshll.u32 %s220_s12, 7  ;;  %s219_s10 = scalar_lea.sflag [#allocation7], %s218_s19 }
  0x69   : > { %s1246_s21 = scalar_lea.vmem [#allocation6], %s666_s5  ;;  %p1335_p3 = scmp.ne.s32.totalorder %s1329_s8, 0 }
  0x6b   : > { %1004 = dma.done.wait (%p1335_p3), %s219_s10, 3072  }
  0x6c   : > { %1006 = vsyncadd (%p1335_p3), %s219_s10, 4294964224  ;;  %s667_s9 = sshll.u32 %s220_s12, 6  ;;  %p668_p5 = scmp.ne.s32.totalorder %s1025_s15, 0 }
  0x6d   : > { %s1252_s4 = scalar_lea.vmem [#allocation8], %s667_s9  ;;  %v1042_v0 = vmov (!%p668_p5), 0.0  }
  0x6e   : > { %261 = sbr.rel (%p668_p5) target bundleno = 117 (0x75), region = 48  ;;  %262 = vst [vmem:[#allocation2] sm:$0xff] (!%p668_p5), %v1042_v0  ;;  %263 = vst [vmem:[#allocation2 + $0x8] sm:$0xff] (!%p668_p5), %v1042_v0 }
  0x75 PF: > { %v820_v1 = vld [vmem:[%s1246_s21 + $0x4] ss:$8 sps:$4 sm:$0xff]   ;;  %v822_v2 = vld [vmem:[%s1246_s21] ss:$8 sps:$4 sm:$0xff]   ;;  %v1043_v3 = vmov 0   ;;  %v844_v18 = vld [vmem:[#allocation3] sm:$0xff]  }
  0x76   : > { %400 = vmatprep.mubr.bf16.mxu0 %v1043_v3  ;;  %368 = vmatprep.subr.bf16.mxu0 %v820_v1  ;;  %v823_v4 = vld [vmem:[%s1246_s21 + $0x14] ss:$8 sps:$4 sm:$0xff]   ;;  %v825_v5 = vld [vmem:[%s1246_s21 + $0x10] ss:$8 sps:$4 sm:$0xff]   ;;  %v826_v6 = vld [vmem:[%s1246_s21 + $0x24] ss:$8 sps:$4 sm:$0xff]  }
  0x77   : > { %369 = vmatpush1.bf16.msra.mxu0 %v822_v2  ;;  %v828_v7 = vld [vmem:[%s1246_s21 + $0x20] ss:$8 sps:$4 sm:$0xff]   ;;  %v829_v8 = vld [vmem:[%s1246_s21 + $0x34] ss:$8 sps:$4 sm:$0xff]   ;;  %v831_v9 = vld [vmem:[%s1246_s21 + $0x30] ss:$8 sps:$4 sm:$0xff]  }
  0x78   : > { %370 = vmatprep.subr.bf16.mxu0 %v823_v4  ;;  %v832_v10 = vld [vmem:[%s1246_s21 + $0x44] ss:$8 sps:$4 sm:$0xff]   ;;  %v834_v11 = vld [vmem:[%s1246_s21 + $0x40] ss:$8 sps:$4 sm:$0xff]   ;;  %v835_v12 = vld [vmem:[%s1246_s21 + $0x54] ss:$8 sps:$4 sm:$0xff]  }
  0x79   : > { %v837_v13 = vld [vmem:[%s1246_s21 + $0x50] ss:$8 sps:$4 sm:$0xff]   ;;  %v838_v14 = vld [vmem:[%s1246_s21 + $0x64] ss:$8 sps:$4 sm:$0xff]   ;;  %v840_v15 = vld [vmem:[%s1246_s21 + $0x60] ss:$8 sps:$4 sm:$0xff]  }
  0x7a   : > { %v841_v16 = vld [vmem:[%s1246_s21 + $0x74] ss:$8 sps:$4 sm:$0xff]   ;;  %v843_v17 = vld [vmem:[%s1246_s21 + $0x70] ss:$8 sps:$4 sm:$0xff]   ;;  %v845_v19 = vld [vmem:[%s1252_s4] sm:$0xff]   ;;  %v1044_v20 = vmov 0.0  }
  0x7b   : > { %371 = vmatpush1.bf16.msra.mxu0 %v825_v5  ;;  %712 = vmatprep.subr.bf16.mxu1 %v1044_v20  ;;  %v846_v21 = vld [vmem:[%s1252_s4 + $0x8] sm:$0xff]   ;;  %v847_v22 = vld [vmem:[%s1252_s4 + $0x10] sm:$0xff]   ;;  %v848_v23 = vld [vmem:[%s1252_s4 + $0x18] sm:$0xff]   ;;  %vm1045_vm0 = vmmov 0   ;;  %p696_p11 = scmp.ne.s32.totalorder %s1025_s15, 1 }
  0x7c   : > { %372 = vmatprep.subr.bf16.mxu0 %v826_v6  ;;  %713 = vmatpush3.bf16.msra.mxu1 %v845_v19  ;;  %v849_v24 = vld [vmem:[%s1252_s4 + $0x20] sm:$0xff]   ;;  %v850_v25 = vld [vmem:[%s1252_s4 + $0x28] sm:$0xff]   ;;  %v851_v26 = vld [vmem:[%s1252_s4 + $0x30] sm:$0xff]  }
  0x7d   : > { %714 = vmatprep.subr.bf16.mxu1 %v1044_v20  ;;  %v852_v27 = vld [vmem:[%s1252_s4 + $0x38] sm:$0xff]   ;;  %728 = vmatprep.mubr.msk.bf16.mxu1 %vm1045_vm0, %v1044_v20  ;;  %v427_v45 = vld [vmem:[#allocation2] sm:$0xff]  ;;  %v428_v47 = vld [vmem:[#allocation2 + $0x8] sm:$0xff] }
  0x7f   : > { %373 = vmatpush1.bf16.msra.mxu0 %v828_v7 }
  0x80   : > { %374 = vmatprep.subr.bf16.mxu0 %v829_v8  ;;  %715 = vmatpush3.bf16.msra.mxu1 %v846_v21 }
  0x81   : > { %716 = vmatprep.subr.bf16.mxu1 %v1044_v20 }
  0x83   : > { %375 = vmatpush1.bf16.msra.mxu0 %v831_v9 }
  0x84   : > { %376 = vmatprep.subr.bf16.mxu0 %v832_v10  ;;  %717 = vmatpush3.bf16.msra.mxu1 %v847_v22 }
  0x85   : > { %718 = vmatprep.subr.bf16.mxu1 %v1044_v20 }
  0x87   : > { %377 = vmatpush1.bf16.msra.mxu0 %v834_v11 }
  0x88   : > { %378 = vmatprep.subr.bf16.mxu0 %v835_v12  ;;  %719 = vmatpush3.bf16.msra.mxu1 %v848_v23 }
  0x89   : > { %720 = vmatprep.subr.bf16.mxu1 %v1044_v20 }
  0x8b   : > { %379 = vmatpush1.bf16.msra.mxu0 %v837_v13 }
  0x8c   : > { %380 = vmatprep.subr.bf16.mxu0 %v838_v14  ;;  %721 = vmatpush3.bf16.msra.mxu1 %v849_v24 }
  0x8d   : > { %722 = vmatprep.subr.bf16.mxu1 %v1044_v20 }
  0x8f   : > { %381 = vmatpush1.bf16.msra.mxu0 %v840_v15 }
  0x90   : > { %382 = vmatprep.subr.bf16.mxu0 %v841_v16  ;;  %723 = vmatpush3.bf16.msra.mxu1 %v850_v25 }
  0x91   : > { %724 = vmatprep.subr.bf16.mxu1 %v1044_v20 }
  0x93   : > { %383 = vmatpush1.bf16.msra.mxu0 %v843_v17 }
  0x94   : > { %725 = vmatpush3.bf16.msra.mxu1 %v851_v26 }
  0x95   : > { %726 = vmatprep.subr.bf16.mxu1 %v1044_v20 }
  0x96   : > { %401 = vmatmul.mubr.bf16.vlgmr.msra.gmra.mrb[0].mxu0 %v844_v18 }
  0x98   : > { %727 = vmatpush3.bf16.msra.mxu1 %v852_v27 }
 0x169   : > { %v402_v28 = vpop.f32.mrb[0].mxu0 }
 0x16a   : > { %v686_v29 = vmul.f32 -1.442695, %v402_v28  ;;  %v404_v30 = vpop.f32.mrb[1].mxu0 }
 0x16b   : > { %v406_v31 = vpop.f32.mrb[2].mxu0 }
 0x16c   : > { %853 = vpow2.f32 %v686_v29  ;;  %v687_v32 = vmul.f32 -1.442695, %v406_v31  ;;  %v408_v33 = vpop.f32.mrb[3].mxu0 }
 0x16e   : > { %855 = vpow2.f32 %v687_v32 }
 0x176   : > { %v854_v34 = vpop.eup %853 }
 0x177   : > { %v417_v35 = vadd.f32 1.0, %v854_v34 }
 0x178   : > { %v856_v36 = vpop.eup %855 }
 0x179   : > { %857 = vrcp.f32 %v417_v35  ;;  %v418_v37 = vadd.f32 1.0, %v856_v36 }
 0x17b   : > { %859 = vrcp.f32 %v418_v37 }
 0x183   : > { %v858_v38 = vpop.eup %857 }
 0x184   : > { %v423_v39 = vmul.f32 %v858_v38, %v402_v28 }
 0x185   : > { %v860_v40 = vpop.eup %859 }
 0x186   : > { %v425_v41 = vmul.f32 %v423_v39, %v404_v30  ;;  %v424_v42 = vmul.f32 %v860_v40, %v406_v31 }
 0x188   : > { %v426_v43 = vmul.f32 %v424_v42, %v408_v33 }
 0x18a   : > { %v429_v44 = vpack.c.bf16 %v426_v43, %v425_v41 }
 0x18c   : > { %729 = vmatmul.mubr.bf16.vlgmr.msra.gmra.mrb[0].mxu1 %v429_v44 }
 0x25e   : > { %542 = sbr.rel (%p696_p11) target bundleno = 621 (0x26d), region = 52 }
 0x25f   : > { %v528_v46 = vpop.f32.mrb[0].mxu1 }
 0x260   : > { %v535_v48 = vadd.f32 %v528_v46, %v427_v45  ;;  %v730_v49 = vpop.f32.mrb[1].mxu1 }
 0x261   : > { %v531_v50 = vpop.f32.mrb[2].mxu1 }
 0x262   : > { %537 = vst [vmem:[#allocation2] sm:$0xff] %v535_v48  ;;  %v536_v51 = vadd.f32 %v531_v50, %v428_v47  ;;  %v731_v52 = vpop.f32.mrb[3].mxu1 }
 0x264   : > { %538 = vst [vmem:[#allocation2 + $0x8] sm:$0xff] %v536_v51 }
 0x269   : > { %v543_v53 = vld [vmem:[#allocation2] sm:$0xff] }
 0x26a   : > { %545 = vst [vmem:[#allocation9] sm:$0xff] %v543_v53 }
 0x26b   : > { %v544_v54 = vld [vmem:[#allocation2 + $0x8] sm:$0xff] }
 0x26c   : > { %546 = vst [vmem:[#allocation9 + $0x8] sm:$0xff] %v544_v54 }
 0x26d PF: > { %p758_p1 = scmp.eq.s32.totalorder %s1158_s7, 1  ;;  %s1046_s8 = smov [#allocation9]  }
 0x26e   : > { %s556_s11 = sshll.u32 %s1046_s8, 4  ;;  %s557_s11 = int_to_ptr.vmem [resolvable:$true] %s556_s11 }
 0x26f   : > { %s949_s20 = scalar_lea.vmem %s557_s11, 256  ;;  %p956_p9 = scmp.lt.s32.totalorder %s557_s11, %s557_s11 }
 0x270   : > { %p950_p6 = scmp.ne.s32.totalorder %s557_s11, %s949_s20  ;;  %p957_p12 = scmp.lt.s32.totalorder %s949_s20, %s949_s20 }
 0x272   : > { %p951_p4 = pnand %p950_p6, %p758_p1  ;;  %p958_p10 = por %p957_p12, %p956_p9 }
 0x274   : > { %p952_p7 = pneg %p951_p4 }
 0x276   : > { %p959_p0 = pnand %p958_p10, %p952_p7 }
 0x278   : > { %962 = shalt.err (!%p959_p0)
}
 0x279   : > { %s963_s23 = scalar_lea.hbm %s1324_s3, 256 }
 0x27a   : > { %p964_p8 = scmp.ne.s32.totalorder %s1324_s3, %s963_s23  ;;  %p969_p3 = scmp.lt.u32.totalorder %s963_s23, %s1324_s3 }
 0x27c   : > { %p965_p2 = pnand %p964_p8, %p758_p1 }
 0x27e   : > { %p966_p13 = pneg %p965_p2 }
 0x280   : > { %p971_p5 = pnand %p969_p3, %p966_p13 }
 0x282   : > { %974 = shalt.err (!%p971_p5)
}
 0x283   : > { %s1047_s29 = smov 128   ;;  %s1048_s6 = smov 8  }
 0x284   : > { %741 = dma.vmem_to_hbm [thread:$0]  (%p758_p1), %s557_s11, 256, %s1324_s3, [#allocation5], %s1047_s29, %s1047_s29, %s1048_s6  }
 0x285   : > { %1008 = dma.done.wait (%p758_p1), [#allocation5], 256  }
 0x286   : > { %1010 = vsyncadd (%p758_p1), [#allocation5], 4294967040 }
 0x287 PF: > { %s18_s17 = sadd.s32 1, %s1033_s17   ;;  %s1336_s12 = smov %s1017_s13 }
 0x288   : > { %p15_p11 = scmp.ge.s32.totalorder %s18_s17, 4   ;;  %s1337_s13 = smov %s1021_s14 }
 0x289   : > { %s1338_s14 = smov %s1113_s24  ;;  %s1339_s15 = smov %s1029_s16 }
 0x28a   : > { %s1340_s16 = smov %s1342_s18  ;;  %17 = sbr.rel (!%p15_p11) target bundleno = 6 (0x6), region = 95 }
 0x291   :  { %572 = vsyncpa [#allocation4], 1 }
 0x292   :  { %574 = vsyncpa [#allocation4 + $0x1], 1 }
 0x293   :  { %575 = vsyncpa [#allocation7], 1 }
 0x294   :  { %577 = vsyncpa [#allocation7 + $0x1], 1 }
 0x295   :  { %578 = vsyncpa [#allocation5], 1 }
 0x296   :  { %580 = vsyncpa [#allocation5 + $0x1], 1 }

</bundles_post_ra>
